<compile_context>
chip_gen: v6e
topology: v6e:2x2x1
jax: 0.10.0
libtpu: 0.0.40
codegen_flags: <defaults>
</compile_context>

<pallas_src>
import jax
import jax.numpy as jnp
import numpy as np
from jax.experimental import pallas as pl
from jax.experimental.pallas import tpu as pltpu

LANES = 128


def _round_up(x, m):
    return ((x + m - 1) // m) * m


def _sublane_multiple(dtype):
    # min second-to-last tile dim: 8 for 32-bit, 16 for 16-bit, 32 for 8-bit
    bits = jnp.dtype(dtype).itemsize * 8
    return max(8, 256 // bits)


def _chip_config():
    """Return (max_tile_rows, n_core_splits) for the local TPU generation."""
    kind = ""
    try:
        kind = jax.devices()[0].device_kind.lower()
    except Exception:
        pass
    if "v7" in kind:
        return 2048, 2          # 2 TCs/chip, 3.2 TB/s HBM
    if "v6" in kind:
        return 2048, 1          # 16 MiB double-buffered f32, within 32 MiB scoped
    if "v5p" in kind or "v4" in kind:
        return 1024, 2          # megacore
    if "v5" in kind:            # v5e / v5 lite: 16 MiB scoped-VMEM default
        return 1024, 1
    return 512, 1


def _make_kernel(rows, tile_r, spc, has_identity, needs_mask):
    """Build the loss kernel.

    With identity:    8 inputs, 6 (8,128) f32 accumulator outputs.
    Without identity: 6 inputs, 4 (8,128) f32 accumulator outputs.
    The output block index is (core, 0), constant over the serial grid axis,
    so each output block acts as a VMEM-resident per-core accumulator.
    """

    def kernel(*refs):
        if has_identity:
            (rA, rB, fA, fB, cA, cB, iA, iB,
             o_ga, o_gb, o_ca, o_cb, o_ia, o_ib) = refs
            outs = (o_ga, o_gb, o_ca, o_cb, o_ia, o_ib)
        else:
            (rA, rB, fA, fB, cA, cB,
             o_ga, o_gb, o_ca, o_cb) = refs
            outs = (o_ga, o_gb, o_ca, o_cb)

        core = pl.program_id(0)
        step = pl.program_id(1)

        @pl.when(step == 0)
        def _init():
            for o in outs:
                o[...] = jnp.zeros_like(o)

        if needs_mask:
            # Mask rows beyond the true extent (ragged last block and/or the
            # clamped duplicate block on the last core).  jnp.where (select)
            # is NaN-safe against uninitialized partial-block contents.
            row_ids = jax.lax.broadcasted_iota(jnp.int32, (tile_r, LANES), 0)
            global_row = (core * spc + step) * tile_r + row_ids
            valid = global_row < rows
        else:
            valid = None

        def partial_sse(a, b):
            # (tile_r, 128) -> (8, 128) partial sum of squared error.
            # Pure sublane-group VPU adds; cross-lane reduction is deferred
            # to the wrapper (tiny).
            d = a.astype(jnp.float32) - b
            sq = d * d
            if valid is not None:
                sq = jnp.where(valid, sq, 0.0)
            return jnp.sum(sq.reshape(-1, 8, LANES), axis=0)

        rAf = rA[...].astype(jnp.float32)
        rBf = rB[...].astype(jnp.float32)

        # MSE(fake_B, ones) / MSE(fake_A, ones): sum of (x - 1)^2
        o_ga[...] += partial_sse(fB[...], 1.0)
        o_gb[...] += partial_sse(fA[...], 1.0)
        # cycle-consistency terms
        o_ca[...] += partial_sse(cA[...], rAf)
        o_cb[...] += partial_sse(cB[...], rBf)
        if has_identity:
            o_ia[...] += partial_sse(iA[...], rAf)
            o_ib[...] += partial_sse(iB[...], rBf)

    return kernel


def cyclegan_loss(real_A, real_B, fake_A, fake_B, cycle_A, cycle_B,
                  identity_A=None, identity_B=None,
                  *, lambda_A=10.0, lambda_B=10.0, lambda_identity=0.5):
    """Pallas implementation of CycleGANLoss.forward."""
    has_identity = identity_A is not None and identity_B is not None

    n = int(np.prod(real_A.shape))

    tensors = [real_A, real_B, fake_A, fake_B, cycle_A, cycle_B]
    if has_identity:
        tensors += [identity_A, identity_B]
    # zero-SSE pad values for the (< 128 element) lane tail:
    #   fake_* -> 1.0  ((x-1)^2 = 0);  real/cycle/identity -> 0.0 (a-b = 0)
    pad_vals = [0.0, 0.0, 1.0, 1.0, 0.0, 0.0] + ([0.0, 0.0] if has_identity else [])

    rows = -(-n // LANES)
    lane_pad = rows * LANES - n        # < 128; only non-zero for ragged numel

    def flat(x, pad_value):
        x = jnp.asarray(x).reshape(-1)
        if lane_pad:
            x = jnp.pad(x, (0, lane_pad), constant_values=pad_value)
        return x.reshape(rows, LANES)

    inputs = tuple(flat(x, v) for x, v in zip(tensors, pad_vals))

    # ---- per-generation tiling / core split ----
    max_rows, n_splits = _chip_config()
    sub = max(_sublane_multiple(x.dtype) for x in inputs)
    tile_r = min(_round_up(max_rows, sub), _round_up(rows, sub))
    nblocks = -(-rows // tile_r)
    spc = -(-nblocks // n_splits)            # serial steps per core
    grid = (n_splits, spc)
    needs_mask = (rows % tile_r != 0) or (n_splits * spc != nblocks)

    n_acc = 6 if has_identity else 4

    if n_splits * spc == nblocks:
        in_index = lambda c, i: (c * spc + i, 0)
    else:
        # clamp the (masked-out) overflow step of the last core
        in_index = lambda c, i: (jnp.minimum(c * spc + i, nblocks - 1), 0)

    in_spec = pl.BlockSpec((tile_r, LANES), in_index)
    out_spec = pl.BlockSpec((8, LANES), lambda c, i: (c, 0))

    # explicit scoped-VMEM budget: double-buffered input streams + outputs
    in_bytes = sum(2 * tile_r * LANES * jnp.dtype(x.dtype).itemsize
                   for x in inputs)
    out_bytes = n_acc * 2 * 8 * LANES * 4
    vmem_limit = min(int(in_bytes + out_bytes + (8 << 20)), 64 << 20)

    kernel = _make_kernel(rows, tile_r, spc, has_identity, needs_mask)

    outs = pl.pallas_call(
        kernel,
        out_shape=tuple(
            jax.ShapeDtypeStruct((n_splits * 8, LANES), jnp.float32)
            for _ in range(n_acc)),
        grid=grid,
        in_specs=[in_spec] * len(inputs),
        out_specs=tuple(out_spec for _ in range(n_acc)),
        compiler_params=pltpu.CompilerParams(
            dimension_semantics=("parallel", "arbitrary"),
            vmem_limit_bytes=vmem_limit),
    )(*inputs)

    # tiny cross-core / cross-lane reductions + mean / lambda scaling
    inv_n = 1.0 / n
    g_a = jnp.sum(outs[0]) * inv_n
    g_b = jnp.sum(outs[1]) * inv_n
    c_a = jnp.sum(outs[2]) * (inv_n * lambda_A)
    c_b = jnp.sum(outs[3]) * (inv_n * lambda_B)
    if has_identity:
        ident = (jnp.sum(outs[4]) + jnp.sum(outs[5])) * (inv_n * lambda_identity)
    else:
        ident = jnp.float32(0.0)
    return {'G_A': g_a, 'G_B': g_b, 'cycle_A': c_a, 'cycle_B': c_b,
            'identity': ident}


def _reference(real_A, real_B, fake_A, fake_B, cycle_A, cycle_B,
               identity_A, identity_B, lambda_A, lambda_B, lambda_identity):
    mse = lambda a, b: jnp.mean((a.astype(jnp.float32) - b.astype(jnp.float32)) ** 2)
    out = {
        'G_A': mse(fake_B, jnp.ones_like(fake_B)),
        'G_B': mse(fake_A, jnp.ones_like(fake_A)),
        'cycle_A': lambda_A * mse(cycle_A, real_A),
        'cycle_B': lambda_B * mse(cycle_B, real_B),
        'identity': jnp.float32(0.0),
    }
    if identity_A is not None and identity_B is not None:
        out['identity'] = lambda_identity * (mse(identity_A, real_A) +
                                             mse(identity_B, real_B))
    return out


if __name__ == "__main__":
    lambda_A, lambda_B, lambda_identity = 10.0, 10.0, 0.5
    ok = True

    # ---- case 1: f32, aligned shape, with identity ----
    ks = jax.random.split(jax.random.PRNGKey(0), 8)
    shape = (2, 4, 16, 16)  # NCHW
    (real_A, real_B, fake_A, fake_B,
     cycle_A, cycle_B, identity_A, identity_B) = (
        jax.random.normal(k, shape, dtype=jnp.float32) for k in ks)

    losses = jax.block_until_ready(
        cyclegan_loss(real_A, real_B, fake_A, fake_B, cycle_A, cycle_B,
                      identity_A, identity_B,
                      lambda_A=lambda_A, lambda_B=lambda_B,
                      lambda_identity=lambda_identity))
    ref = _reference(real_A, real_B, fake_A, fake_B, cycle_A, cycle_B,
                     identity_A, identity_B,
                     lambda_A, lambda_B, lambda_identity)
    ok &= all(np.allclose(np.asarray(losses[k]), np.asarray(ref[k]),
                          rtol=1e-5, atol=1e-5) for k in ref)

    # ---- case 2: no-identity path (6-input kernel variant) ----
    losses_no_id = jax.block_until_ready(
        cyclegan_loss(real_A, real_B, fake_A, fake_B, cycle_A, cycle_B,
                      lambda_A=lambda_A, lambda_B=lambda_B,
                      lambda_identity=lambda_identity))
    ok &= float(losses_no_id['identity']) == 0.0
    for k in ('G_A', 'G_B', 'cycle_A', 'cycle_B'):
        ok &= np.allclose(np.asarray(losses_no_id[k]), np.asarray(ref[k]),
                          rtol=1e-5, atol=1e-5)

    # ---- case 3: bf16 inputs, odd shape (exercises lane tail + native dtype) ----
    ks2 = jax.random.split(jax.random.PRNGKey(1), 8)
    shape2 = (2, 3, 17, 19)
    arrs2 = [jax.random.normal(k, shape2, dtype=jnp.bfloat16) for k in ks2]
    losses2 = jax.block_until_ready(
        cyclegan_loss(*arrs2, lambda_A=lambda_A, lambda_B=lambda_B,
                      lambda_identity=lambda_identity))
    ref2 = _reference(*arrs2, lambda_A, lambda_B, lambda_identity)
    ok &= all(np.allclose(np.asarray(losses2[k]), np.asarray(ref2[k]),
                          rtol=1e-4, atol=1e-4) for k in ref2)

    if ok:
        print("KERNEL_OK")
    else:
        print("MISMATCH",
              {k: (float(losses[k]), float(ref[k])) for k in ref},
              {k: (float(losses2[k]), float(ref2[k])) for k in ref2})
</pallas_src>

<mosaic_0001>
module attributes {stable_mosaic.version = 11 : i64} {
  func.func @kernel(%arg0: i32, %arg1: i32, %arg2: memref<16x128xf32, #tpu.memory_space<vmem>>, %arg3: memref<16x128xf32, #tpu.memory_space<vmem>>, %arg4: memref<16x128xf32, #tpu.memory_space<vmem>>, %arg5: memref<16x128xf32, #tpu.memory_space<vmem>>, %arg6: memref<16x128xf32, #tpu.memory_space<vmem>>, %arg7: memref<16x128xf32, #tpu.memory_space<vmem>>, %arg8: memref<16x128xf32, #tpu.memory_space<vmem>>, %arg9: memref<16x128xf32, #tpu.memory_space<vmem>>, %arg10: memref<8x128xf32, #tpu.memory_space<vmem>>, %arg11: memref<8x128xf32, #tpu.memory_space<vmem>>, %arg12: memref<8x128xf32, #tpu.memory_space<vmem>>, %arg13: memref<8x128xf32, #tpu.memory_space<vmem>>, %arg14: memref<8x128xf32, #tpu.memory_space<vmem>>, %arg15: memref<8x128xf32, #tpu.memory_space<vmem>>) attributes {dimension_semantics = [#tpu.dimension_semantics<parallel>, #tpu.dimension_semantics<arbitrary>], iteration_bounds = array<i64: 1, 1>, scalar_prefetch = 0 : i64, scratch_operands = 0 : i64, tpu.core_type = #tpu.core_type<tc>, window_params = [{transform_indices = @transform_0, window_bounds = array<i64: 16, 128>}, {transform_indices = @transform_1, window_bounds = array<i64: 16, 128>}, {transform_indices = @transform_2, window_bounds = array<i64: 16, 128>}, {transform_indices = @transform_3, window_bounds = array<i64: 16, 128>}, {transform_indices = @transform_4, window_bounds = array<i64: 16, 128>}, {transform_indices = @transform_5, window_bounds = array<i64: 16, 128>}, {transform_indices = @transform_6, window_bounds = array<i64: 16, 128>}, {transform_indices = @transform_7, window_bounds = array<i64: 16, 128>}, {transform_indices = @transform_8, window_bounds = array<i64: 8, 128>}, {transform_indices = @transform_9, window_bounds = array<i64: 8, 128>}, {transform_indices = @transform_10, window_bounds = array<i64: 8, 128>}, {transform_indices = @transform_11, window_bounds = array<i64: 8, 128>}, {transform_indices = @transform_12, window_bounds = array<i64: 8, 128>}, {transform_indices = @transform_13, window_bounds = array<i64: 8, 128>}]} {
    %c0_i32 = arith.constant 0 : i32
    %0 = arith.cmpi eq, %arg1, %c0_i32 : i32
    %1 = arith.extui %0 : i1 to i32
    %c0_i32_0 = arith.constant 0 : i32
    %2 = arith.cmpi ne, %1, %c0_i32_0 : i32
    scf.if %2 {
      %cst_47 = arith.constant 0.000000e+00 : f32
      %55 = vector.broadcast %cst_47 : f32 to vector<8x128xf32>
      %c0_48 = arith.constant 0 : index
      %c0_49 = arith.constant 0 : index
      %56 = vector.load %arg10[%c0_48, %c0_49] : memref<8x128xf32, #tpu.memory_space<vmem>>, vector<8x128xf32>
      tpu.vector_store %arg10[%c0_48, %c0_49], %55 {strides = array<i32>} : memref<8x128xf32, #tpu.memory_space<vmem>>, vector<8x128xf32>,
      %cst_50 = arith.constant 0.000000e+00 : f32
      %57 = vector.broadcast %cst_50 : f32 to vector<8x128xf32>
      %c0_51 = arith.constant 0 : index
      %c0_52 = arith.constant 0 : index
      %58 = vector.load %arg11[%c0_51, %c0_52] : memref<8x128xf32, #tpu.memory_space<vmem>>, vector<8x128xf32>
      tpu.vector_store %arg11[%c0_51, %c0_52], %57 {strides = array<i32>} : memref<8x128xf32, #tpu.memory_space<vmem>>, vector<8x128xf32>,
      %cst_53 = arith.constant 0.000000e+00 : f32
      %59 = vector.broadcast %cst_53 : f32 to vector<8x128xf32>
      %c0_54 = arith.constant 0 : index
      %c0_55 = arith.constant 0 : index
      %60 = vector.load %arg12[%c0_54, %c0_55] : memref<8x128xf32, #tpu.memory_space<vmem>>, vector<8x128xf32>
      tpu.vector_store %arg12[%c0_54, %c0_55], %59 {strides = array<i32>} : memref<8x128xf32, #tpu.memory_space<vmem>>, vector<8x128xf32>,
      %cst_56 = arith.constant 0.000000e+00 : f32
      %61 = vector.broadcast %cst_56 : f32 to vector<8x128xf32>
      %c0_57 = arith.constant 0 : index
      %c0_58 = arith.constant 0 : index
      %62 = vector.load %arg13[%c0_57, %c0_58] : memref<8x128xf32, #tpu.memory_space<vmem>>, vector<8x128xf32>
      tpu.vector_store %arg13[%c0_57, %c0_58], %61 {strides = array<i32>} : memref<8x128xf32, #tpu.memory_space<vmem>>, vector<8x128xf32>,
      %cst_59 = arith.constant 0.000000e+00 : f32
      %63 = vector.broadcast %cst_59 : f32 to vector<8x128xf32>
      %c0_60 = arith.constant 0 : index
      %c0_61 = arith.constant 0 : index
      %64 = vector.load %arg14[%c0_60, %c0_61] : memref<8x128xf32, #tpu.memory_space<vmem>>, vector<8x128xf32>
      tpu.vector_store %arg14[%c0_60, %c0_61], %63 {strides = array<i32>} : memref<8x128xf32, #tpu.memory_space<vmem>>, vector<8x128xf32>,
      %cst_62 = arith.constant 0.000000e+00 : f32
      %65 = vector.broadcast %cst_62 : f32 to vector<8x128xf32>
      %c0_63 = arith.constant 0 : index
      %c0_64 = arith.constant 0 : index
      %66 = vector.load %arg15[%c0_63, %c0_64] : memref<8x128xf32, #tpu.memory_space<vmem>>, vector<8x128xf32>
      tpu.vector_store %arg15[%c0_63, %c0_64], %65 {strides = array<i32>} : memref<8x128xf32, #tpu.memory_space<vmem>>, vector<8x128xf32>,
    } else {
    }
    %c0 = arith.constant 0 : index
    %c0_1 = arith.constant 0 : index
    %3 = vector.load %arg2[%c0, %c0_1] : memref<16x128xf32, #tpu.memory_space<vmem>>, vector<16x128xf32>
    %c0_2 = arith.constant 0 : index
    %c0_3 = arith.constant 0 : index
    %4 = vector.load %arg3[%c0_2, %c0_3] : memref<16x128xf32, #tpu.memory_space<vmem>>, vector<16x128xf32>
    %c0_4 = arith.constant 0 : index
    %c0_5 = arith.constant 0 : index
    %5 = vector.load %arg10[%c0_4, %c0_5] : memref<8x128xf32, #tpu.memory_space<vmem>>, vector<8x128xf32>
    %c0_6 = arith.constant 0 : index
    %c0_7 = arith.constant 0 : index
    %6 = vector.load %arg5[%c0_6, %c0_7] : memref<16x128xf32, #tpu.memory_space<vmem>>, vector<16x128xf32>
    %cst = arith.constant 1.000000e+00 : f32
    %7 = vector.broadcast %cst : f32 to vector<16x128xf32>
    %8 = arith.subf %6, %7 : vector<16x128xf32>
    %9 = arith.mulf %8, %8 : vector<16x128xf32>
    %10 = vector.shape_cast %9 : vector<16x128xf32> to vector<2x8x128xf32>
    %cst_8 = arith.constant dense<0.000000e+00> : vector<8x128xf32>
    %11 = vector.multi_reduction <add>, %10, %cst_8 [0] : vector<2x8x128xf32> to vector<8x128xf32>
    %12 = arith.addf %5, %11 : vector<8x128xf32>
    %c0_9 = arith.constant 0 : index
    %c0_10 = arith.constant 0 : index
    %13 = vector.load %arg10[%c0_9, %c0_10] : memref<8x128xf32, #tpu.memory_space<vmem>>, vector<8x128xf32>
    tpu.vector_store %arg10[%c0_9, %c0_10], %12 {strides = array<i32>} : memref<8x128xf32, #tpu.memory_space<vmem>>, vector<8x128xf32>,
    %c0_11 = arith.constant 0 : index
    %c0_12 = arith.constant 0 : index
    %14 = vector.load %arg11[%c0_11, %c0_12] : memref<8x128xf32, #tpu.memory_space<vmem>>, vector<8x128xf32>
    %c0_13 = arith.constant 0 : index
    %c0_14 = arith.constant 0 : index
    %15 = vector.load %arg4[%c0_13, %c0_14] : memref<16x128xf32, #tpu.memory_space<vmem>>, vector<16x128xf32>
    %cst_15 = arith.constant 1.000000e+00 : f32
    %16 = vector.broadcast %cst_15 : f32 to vector<16x128xf32>
    %17 = arith.subf %15, %16 : vector<16x128xf32>
    %18 = arith.mulf %17, %17 : vector<16x128xf32>
    %19 = vector.shape_cast %18 : vector<16x128xf32> to vector<2x8x128xf32>
    %cst_16 = arith.constant dense<0.000000e+00> : vector<8x128xf32>
    %20 = vector.multi_reduction <add>, %19, %cst_16 [0] : vector<2x8x128xf32> to vector<8x128xf32>
    %21 = arith.addf %14, %20 : vector<8x128xf32>
    %c0_17 = arith.constant 0 : index
    %c0_18 = arith.constant 0 : index
    %22 = vector.load %arg11[%c0_17, %c0_18] : memref<8x128xf32, #tpu.memory_space<vmem>>, vector<8x128xf32>
    tpu.vector_store %arg11[%c0_17, %c0_18], %21 {strides = array<i32>} : memref<8x128xf32, #tpu.memory_space<vmem>>, vector<8x128xf32>,
    %c0_19 = arith.constant 0 : index
    %c0_20 = arith.constant 0 : index
    %23 = vector.load %arg12[%c0_19, %c0_20] : memref<8x128xf32, #tpu.memory_space<vmem>>, vector<8x128xf32>
    %c0_21 = arith.constant 0 : index
    %c0_22 = arith.constant 0 : index
    %24 = vector.load %arg6[%c0_21, %c0_22] : memref<16x128xf32, #tpu.memory_space<vmem>>, vector<16x128xf32>
    %25 = arith.subf %24, %3 : vector<16x128xf32>
    %26 = arith.mulf %25, %25 : vector<16x128xf32>
    %27 = vector.shape_cast %26 : vector<16x128xf32> to vector<2x8x128xf32>
    %cst_23 = arith.constant dense<0.000000e+00> : vector<8x128xf32>
    %28 = vector.multi_reduction <add>, %27, %cst_23 [0] : vector<2x8x128xf32> to vector<8x128xf32>
    %29 = arith.addf %23, %28 : vector<8x128xf32>
    %c0_24 = arith.constant 0 : index
    %c0_25 = arith.constant 0 : index
    %30 = vector.load %arg12[%c0_24, %c0_25] : memref<8x128xf32, #tpu.memory_space<vmem>>, vector<8x128xf32>
    tpu.vector_store %arg12[%c0_24, %c0_25], %29 {strides = array<i32>} : memref<8x128xf32, #tpu.memory_space<vmem>>, vector<8x128xf32>,
    %c0_26 = arith.constant 0 : index
    %c0_27 = arith.constant 0 : index
    %31 = vector.load %arg13[%c0_26, %c0_27] : memref<8x128xf32, #tpu.memory_space<vmem>>, vector<8x128xf32>
    %c0_28 = arith.constant 0 : index
    %c0_29 = arith.constant 0 : index
    %32 = vector.load %arg7[%c0_28, %c0_29] : memref<16x128xf32, #tpu.memory_space<vmem>>, vector<16x128xf32>
    %33 = arith.subf %32, %4 : vector<16x128xf32>
    %34 = arith.mulf %33, %33 : vector<16x128xf32>
    %35 = vector.shape_cast %34 : vector<16x128xf32> to vector<2x8x128xf32>
    %cst_30 = arith.constant dense<0.000000e+00> : vector<8x128xf32>
    %36 = vector.multi_reduction <add>, %35, %cst_30 [0] : vector<2x8x128xf32> to vector<8x128xf32>
    %37 = arith.addf %31, %36 : vector<8x128xf32>
    %c0_31 = arith.constant 0 : index
    %c0_32 = arith.constant 0 : index
    %38 = vector.load %arg13[%c0_31, %c0_32] : memref<8x128xf32, #tpu.memory_space<vmem>>, vector<8x128xf32>
    tpu.vector_store %arg13[%c0_31, %c0_32], %37 {strides = array<i32>} : memref<8x128xf32, #tpu.memory_space<vmem>>, vector<8x128xf32>,
    %c0_33 = arith.constant 0 : index
    %c0_34 = arith.constant 0 : index
    %39 = vector.load %arg14[%c0_33, %c0_34] : memref<8x128xf32, #tpu.memory_space<vmem>>, vector<8x128xf32>
    %c0_35 = arith.constant 0 : index
    %c0_36 = arith.constant 0 : index
    %40 = vector.load %arg8[%c0_35, %c0_36] : memref<16x128xf32, #tpu.memory_space<vmem>>, vector<16x128xf32>
    %41 = arith.subf %40, %3 : vector<16x128xf32>
    %42 = arith.mulf %41, %41 : vector<16x128xf32>
    %43 = vector.shape_cast %42 : vector<16x128xf32> to vector<2x8x128xf32>
    %cst_37 = arith.constant dense<0.000000e+00> : vector<8x128xf32>
    %44 = vector.multi_reduction <add>, %43, %cst_37 [0] : vector<2x8x128xf32> to vector<8x128xf32>
    %45 = arith.addf %39, %44 : vector<8x128xf32>
    %c0_38 = arith.constant 0 : index
    %c0_39 = arith.constant 0 : index
    %46 = vector.load %arg14[%c0_38, %c0_39] : memref<8x128xf32, #tpu.memory_space<vmem>>, vector<8x128xf32>
    tpu.vector_store %arg14[%c0_38, %c0_39], %45 {strides = array<i32>} : memref<8x128xf32, #tpu.memory_space<vmem>>, vector<8x128xf32>,
    %c0_40 = arith.constant 0 : index
    %c0_41 = arith.constant 0 : index
    %47 = vector.load %arg15[%c0_40, %c0_41] : memref<8x128xf32, #tpu.memory_space<vmem>>, vector<8x128xf32>
    %c0_42 = arith.constant 0 : index
    %c0_43 = arith.constant 0 : index
    %48 = vector.load %arg9[%c0_42, %c0_43] : memref<16x128xf32, #tpu.memory_space<vmem>>, vector<16x128xf32>
    %49 = arith.subf %48, %4 : vector<16x128xf32>
    %50 = arith.mulf %49, %49 : vector<16x128xf32>
    %51 = vector.shape_cast %50 : vector<16x128xf32> to vector<2x8x128xf32>
    %cst_44 = arith.constant dense<0.000000e+00> : vector<8x128xf32>
    %52 = vector.multi_reduction <add>, %51, %cst_44 [0] : vector<2x8x128xf32> to vector<8x128xf32>
    %53 = arith.addf %47, %52 : vector<8x128xf32>
    %c0_45 = arith.constant 0 : index
    %c0_46 = arith.constant 0 : index
    %54 = vector.load %arg15[%c0_45, %c0_46] : memref<8x128xf32, #tpu.memory_space<vmem>>, vector<8x128xf32>
    tpu.vector_store %arg15[%c0_45, %c0_46], %53 {strides = array<i32>} : memref<8x128xf32, #tpu.memory_space<vmem>>, vector<8x128xf32>,
    return
  }
  func.func @transform_0(%arg0: i32, %arg1: i32) -> (i32, i32) {
    %c1_i32 = arith.constant 1 : i32
    %0 = arith.muli %arg0, %c1_i32 : i32
    %1 = arith.addi %0, %arg1 : i32
    %c0_i32 = arith.constant 0 : i32
    %c0_i32_0 = arith.constant 0 : i32
    return %1, %c0_i32 : i32, i32
  }
  func.func @transform_1(%arg0: i32, %arg1: i32) -> (i32, i32) {
    %c1_i32 = arith.constant 1 : i32
    %0 = arith.muli %arg0, %c1_i32 : i32
    %1 = arith.addi %0, %arg1 : i32
    %c0_i32 = arith.constant 0 : i32
    %c0_i32_0 = arith.constant 0 : i32
    return %1, %c0_i32 : i32, i32
  }
  func.func @transform_2(%arg0: i32, %arg1: i32) -> (i32, i32) {
    %c1_i32 = arith.constant 1 : i32
    %0 = arith.muli %arg0, %c1_i32 : i32
    %1 = arith.addi %0, %arg1 : i32
    %c0_i32 = arith.constant 0 : i32
    %c0_i32_0 = arith.constant 0 : i32
    return %1, %c0_i32 : i32, i32
  }
  func.func @transform_3(%arg0: i32, %arg1: i32) -> (i32, i32) {
    %c1_i32 = arith.constant 1 : i32
    %0 = arith.muli %arg0, %c1_i32 : i32
    %1 = arith.addi %0, %arg1 : i32
    %c0_i32 = arith.constant 0 : i32
    %c0_i32_0 = arith.constant 0 : i32
    return %1, %c0_i32 : i32, i32
  }
  func.func @transform_4(%arg0: i32, %arg1: i32) -> (i32, i32) {
    %c1_i32 = arith.constant 1 : i32
    %0 = arith.muli %arg0, %c1_i32 : i32
    %1 = arith.addi %0, %arg1 : i32
    %c0_i32 = arith.constant 0 : i32
    %c0_i32_0 = arith.constant 0 : i32
    return %1, %c0_i32 : i32, i32
  }
  func.func @transform_5(%arg0: i32, %arg1: i32) -> (i32, i32) {
    %c1_i32 = arith.constant 1 : i32
    %0 = arith.muli %arg0, %c1_i32 : i32
    %1 = arith.addi %0, %arg1 : i32
    %c0_i32 = arith.constant 0 : i32
    %c0_i32_0 = arith.constant 0 : i32
    return %1, %c0_i32 : i32, i32
  }
  func.func @transform_6(%arg0: i32, %arg1: i32) -> (i32, i32) {
    %c1_i32 = arith.constant 1 : i32
    %0 = arith.muli %arg0, %c1_i32 : i32
    %1 = arith.addi %0, %arg1 : i32
    %c0_i32 = arith.constant 0 : i32
    %c0_i32_0 = arith.constant 0 : i32
    return %1, %c0_i32 : i32, i32
  }
  func.func @transform_7(%arg0: i32, %arg1: i32) -> (i32, i32) {
    %c1_i32 = arith.constant 1 : i32
    %0 = arith.muli %arg0, %c1_i32 : i32
    %1 = arith.addi %0, %arg1 : i32
    %c0_i32 = arith.constant 0 : i32
    %c0_i32_0 = arith.constant 0 : i32
    return %1, %c0_i32 : i32, i32
  }
  func.func @transform_8(%arg0: i32, %arg1: i32) -> (i32, i32) {
    %c0_i32 = arith.constant 0 : i32
    %c0_i32_0 = arith.constant 0 : i32
    return %arg0, %c0_i32 : i32, i32
  }
  func.func @transform_9(%arg0: i32, %arg1: i32) -> (i32, i32) {
    %c0_i32 = arith.constant 0 : i32
    %c0_i32_0 = arith.constant 0 : i32
    return %arg0, %c0_i32 : i32, i32
  }
  func.func @transform_10(%arg0: i32, %arg1: i32) -> (i32, i32) {
    %c0_i32 = arith.constant 0 : i32
    %c0_i32_0 = arith.constant 0 : i32
    return %arg0, %c0_i32 : i32, i32
  }
  func.func @transform_11(%arg0: i32, %arg1: i32) -> (i32, i32) {
    %c0_i32 = arith.constant 0 : i32
    %c0_i32_0 = arith.constant 0 : i32
    return %arg0, %c0_i32 : i32, i32
  }
  func.func @transform_12(%arg0: i32, %arg1: i32) -> (i32, i32) {
    %c0_i32 = arith.constant 0 : i32
    %c0_i32_0 = arith.constant 0 : i32
    return %arg0, %c0_i32 : i32, i32
  }
  func.func @transform_13(%arg0: i32, %arg1: i32) -> (i32, i32) {
    %c0_i32 = arith.constant 0 : i32
    %c0_i32_0 = arith.constant 0 : i32
    return %arg0, %c0_i32 : i32, i32
  }
}

</mosaic_0001>

<bundles_post_ra>
// kernel: tpu_custom_call.1
= control target key start
LH: loop header
LB: loop body
LE: loop exit
PB: predicated region body
PF: predicated region fallthrough
CT: control target
= control target key end

     0   :  { %19 = vsyncpa [#allocation3], 0  ;;  %s859_s0 = inlined_call_operand.hbm [shape: f32[16,128], index: 0, kind: input, shape index: {}]   ;;  %s860_s1 = inlined_call_operand.hbm [shape: f32[16,128], index: 1, kind: input, shape index: {}]   ;;  %s861_s2 = inlined_call_operand.hbm [shape: f32[16,128], index: 2, kind: input, shape index: {}]   ;;  %s862_s3 = inlined_call_operand.hbm [shape: f32[16,128], index: 3, kind: input, shape index: {}]   ;;  %s863_s4 = inlined_call_operand.hbm [shape: f32[16,128], index: 4, kind: input, shape index: {}]   ;;  %s864_s5 = inlined_call_operand.hbm [shape: f32[16,128], index: 5, kind: input, shape index: {}]   ;;  %s865_s6 = inlined_call_operand.hbm [shape: f32[16,128], index: 6, kind: input, shape index: {}]   ;;  %s866_s7 = inlined_call_operand.hbm [shape: f32[16,128], index: 7, kind: input, shape index: {}]   ;;  %s867_s8 = inlined_call_operand.hbm [shape: f32[8,128], index: 8, kind: output, shape index: {0}]   ;;  %s868_s9 = inlined_call_operand.hbm [shape: f32[8,128], index: 9, kind: output, shape index: {1}]   ;;  %s869_s10 = inlined_call_operand.hbm [shape: f32[8,128], index: 10, kind: output, shape index: {2}]   ;;  %s870_s11 = inlined_call_operand.hbm [shape: f32[8,128], index: 11, kind: output, shape index: {3}]   ;;  %s871_s12 = inlined_call_operand.hbm [shape: f32[8,128], index: 12, kind: output, shape index: {4}]   ;;  %s872_s13 = inlined_call_operand.hbm [shape: f32[8,128], index: 13, kind: output, shape index: {5}]  }
   0x1   :  { %20 = vsyncpa [#allocation6], 0 }
   0x2   :  { %21 = vsyncpa [#allocation9], 0 }
   0x3   :  { %22 = vsyncpa [#allocation12], 0 }
   0x4   :  { %23 = vsyncpa [#allocation15], 0 }
   0x5   :  { %24 = vsyncpa [#allocation4], 0 }
   0x6   :  { %25 = vsyncpa [#allocation18], 0 }
   0x7   :  { %26 = vsyncpa [#allocation21], 0 }
   0x8   :  { %27 = vsyncpa [#allocation24], 0  ;;  %s676_s25 = smov [#allocation5]   ;;  %s677_s27 = smov [#allocation8]  }
   0x9   :  { %s53_s26 = sshll.u32 %s676_s25, 4  ;;  %s85_s28 = sshll.u32 %s677_s27, 4  ;;  %s54_s26 = int_to_ptr.vmem [resolvable:$true] %s53_s26  ;;  %s86_s28 = int_to_ptr.vmem [resolvable:$true] %s85_s28 }
   0xa   :  { %s386_s29 = scalar_lea.vmem %s54_s26, 256  ;;  %p391_p1 = scmp.lt.s32.totalorder %s54_s26, %s54_s26 }
   0xb   :  { %p387_p0 = scmp.ne.s32.totalorder %s54_s26, %s386_s29  ;;  %p392_p2 = scmp.lt.s32.totalorder %s386_s29, %s386_s29 }
   0xd   :  { %p393_p3 = por %p392_p2, %p391_p1 }
   0xf   :  { %p394_p4 = pnand %p393_p3, %p387_p0 }
  0x11   :  { %397 = shalt.err (!%p394_p4)
}
  0x12   :  { %s678_s30 = smov 128   ;;  %s679_s14 = smov 8  }
  0x13   :  { %59 = dma.hbm_to_vmem [thread:$0]  %s860_s1, 256, %s54_s26, [#allocation6], %s678_s30, %s678_s30, %s679_s14  }
  0x14   :  { %s406_s17 = scalar_lea.vmem %s86_s28, 256  ;;  %p411_p6 = scmp.lt.s32.totalorder %s86_s28, %s86_s28 }
  0x15   :  { %p407_p5 = scmp.ne.s32.totalorder %s86_s28, %s406_s17  ;;  %p412_p7 = scmp.lt.s32.totalorder %s406_s17, %s406_s17 }
  0x17   :  { %p413_p8 = por %p412_p7, %p411_p6 }
  0x19   :  { %p414_p9 = pnand %p413_p8, %p407_p5 }
  0x1b   :  { %417 = shalt.err (!%p414_p9)
}
  0x1c   :  { %91 = dma.hbm_to_vmem [thread:$0]  %s862_s3, 256, %s86_s28, [#allocation9], %s678_s30, %s678_s30, %s679_s14  }
  0x1d   :  { %s680_s20 = smov [#allocation11]   ;;  %s681_s22 = smov [#allocation2]  }
  0x1e   :  { %s117_s21 = sshll.u32 %s680_s20, 4  ;;  %s37_s23 = sshll.u32 %s681_s22, 4  ;;  %s118_s21 = int_to_ptr.vmem [resolvable:$true] %s117_s21  ;;  %s38_s23 = int_to_ptr.vmem [resolvable:$true] %s37_s23 }
  0x1f   :  { %s426_s1 = scalar_lea.vmem %s118_s21, 256  ;;  %p431_p11 = scmp.lt.s32.totalorder %s118_s21, %s118_s21 }
  0x20   :  { %p427_p10 = scmp.ne.s32.totalorder %s118_s21, %s426_s1  ;;  %p432_p12 = scmp.lt.s32.totalorder %s426_s1, %s426_s1 }
  0x22   :  { %p433_p13 = por %p432_p12, %p431_p11 }
  0x24   :  { %p434_p0 = pnand %p433_p13, %p427_p10 }
  0x26   :  { %437 = shalt.err (!%p434_p0)
}
  0x27   :  { %123 = dma.hbm_to_vmem [thread:$0]  %s864_s5, 256, %s118_s21, [#allocation12], %s678_s30, %s678_s30, %s679_s14  }
  0x28   :  { %s446_s3 = scalar_lea.vmem %s38_s23, 256  ;;  %p451_p2 = scmp.lt.s32.totalorder %s38_s23, %s38_s23 }
  0x29   :  { %p447_p1 = scmp.ne.s32.totalorder %s38_s23, %s446_s3  ;;  %p452_p3 = scmp.lt.s32.totalorder %s446_s3, %s446_s3 }
  0x2b   :  { %p453_p4 = por %p452_p3, %p451_p2 }
  0x2d   :  { %p454_p5 = pnand %p453_p4, %p447_p1 }
  0x2f   :  { %457 = shalt.err (!%p454_p5)
}
  0x30   :  { %43 = dma.hbm_to_vmem [thread:$0]  %s859_s0, 256, %s38_s23, [#allocation3], %s678_s30, %s678_s30, %s679_s14  }
  0x31   :  { %s682_s28 = smov [#allocation7]   ;;  %s683_s15 = smov [#allocation10]  }
  0x32   :  { %s69_s29 = sshll.u32 %s682_s28, 4  ;;  %s101_s16 = sshll.u32 %s683_s15, 4  ;;  %s70_s29 = int_to_ptr.vmem [resolvable:$true] %s69_s29  ;;  %s102_s16 = int_to_ptr.vmem [resolvable:$true] %s101_s16 }
  0x33   :  { %s466_s5 = scalar_lea.vmem %s70_s29, 256  ;;  %p471_p7 = scmp.lt.s32.totalorder %s70_s29, %s70_s29 }
  0x34   :  { %p467_p6 = scmp.ne.s32.totalorder %s70_s29, %s466_s5  ;;  %p472_p8 = scmp.lt.s32.totalorder %s466_s5, %s466_s5 }
  0x36   :  { %p473_p9 = por %p472_p8, %p471_p7 }
  0x38   :  { %p474_p10 = pnand %p473_p9, %p467_p6 }
  0x3a   :  { %477 = shalt.err (!%p474_p10)
}
  0x3b   :  { %75 = dma.hbm_to_vmem [thread:$0]  %s861_s2, 256, %s70_s29, [#allocation6], %s678_s30, %s678_s30, %s679_s14  }
  0x3c   :  { %s486_s0 = scalar_lea.vmem %s102_s16, 256  ;;  %p491_p12 = scmp.lt.s32.totalorder %s102_s16, %s102_s16 }
  0x3d   :  { %p487_p11 = scmp.ne.s32.totalorder %s102_s16, %s486_s0  ;;  %p492_p13 = scmp.lt.s32.totalorder %s486_s0, %s486_s0 }
  0x3f   :  { %p493_p0 = por %p492_p13, %p491_p12 }
  0x41   :  { %p494_p1 = pnand %p493_p0, %p487_p11 }
  0x43   :  { %497 = shalt.err (!%p494_p1)
}
  0x44   :  { %107 = dma.hbm_to_vmem [thread:$0]  %s863_s4, 256, %s102_s16, [#allocation9], %s678_s30, %s678_s30, %s679_s14  }
  0x45   :  { %s684_s21 = smov [#allocation13]   ;;  %s685_s23 = smov [#allocation14]  }
  0x46   :  { %s133_s22 = sshll.u32 %s684_s21, 4  ;;  %s149_s1 = sshll.u32 %s685_s23, 4  ;;  %s134_s22 = int_to_ptr.vmem [resolvable:$true] %s133_s22  ;;  %s150_s1 = int_to_ptr.vmem [resolvable:$true] %s149_s1 }
  0x47   :  { %s506_s2 = scalar_lea.vmem %s134_s22, 256  ;;  %p511_p3 = scmp.lt.s32.totalorder %s134_s22, %s134_s22 }
  0x48   :  { %p507_p2 = scmp.ne.s32.totalorder %s134_s22, %s506_s2  ;;  %p512_p4 = scmp.lt.s32.totalorder %s506_s2, %s506_s2 }
  0x4a   :  { %p513_p5 = por %p512_p4, %p511_p3 }
  0x4c   :  { %p514_p6 = pnand %p513_p5, %p507_p2 }
  0x4e   :  { %517 = shalt.err (!%p514_p6)
}
  0x4f   :  { %139 = dma.hbm_to_vmem [thread:$0]  %s865_s6, 256, %s134_s22, [#allocation12], %s678_s30, %s678_s30, %s679_s14  }
  0x50   :  { %s526_s4 = scalar_lea.vmem %s150_s1, 256  ;;  %p531_p8 = scmp.lt.s32.totalorder %s150_s1, %s150_s1 }
  0x51   :  { %p527_p7 = scmp.ne.s32.totalorder %s150_s1, %s526_s4  ;;  %p532_p9 = scmp.lt.s32.totalorder %s526_s4, %s526_s4 }
  0x53   :  { %p533_p10 = por %p532_p9, %p531_p8 }
  0x55   :  { %p534_p11 = pnand %p533_p10, %p527_p7 }
  0x57   :  { %537 = shalt.err (!%p534_p11)
}
  0x58   :  { %155 = dma.hbm_to_vmem [thread:$0]  %s866_s7, 256, %s150_s1, [#allocation15], %s678_s30, %s678_s30, %s679_s14  }
  0x59   :  { %658 = dma.done.wait [#allocation3], 256  }
  0x5a   :  { %659 = vsyncadd [#allocation3], 4294967040 }
  0x5b   :  { %660 = dma.done.wait [#allocation6], 512  }
  0x5c   :  { %661 = vsyncadd [#allocation6], 4294966784 }
  0x5d   :  { %662 = dma.done.wait [#allocation9], 512  }
  0x5e   :  { %663 = vsyncadd [#allocation9], 4294966784 }
  0x5f   :  { %664 = dma.done.wait [#allocation12], 512  }
  0x60   :  { %665 = vsyncadd [#allocation12], 4294966784 }
  0x61   :  { %666 = dma.done.wait [#allocation15], 256  }
  0x62   :  { %667 = vsyncadd [#allocation15], 4294967040  ;;  %v221_v0 = vld [vmem:[#allocation7] sm:$0xff]  ;;  %v222_v1 = vld [vmem:[#allocation7 + $0x8] sm:$0xff]  ;;  %s686_s6 = smov [#allocation17]   ;;  %s687_s30 = smov [#allocation20]  }
  0x63   :  { %v208_v2 = vld [vmem:[#allocation5] sm:$0xff]  ;;  %v359_v3 = vadd.f32 -1.0, %v221_v0  ;;  %v360_v4 = vadd.f32 -1.0, %v222_v1  ;;  %v209_v5 = vld [vmem:[#allocation5 + $0x8] sm:$0xff]  ;;  %v206_v12 = vld [vmem:[#allocation2] sm:$0xff]  ;;  %s286_s7 = sshll.u32 %s686_s6, 4  ;;  %s287_s7 = int_to_ptr.vmem [resolvable:$true] %s286_s7 }
  0x64   :  { %v241_v6 = vld [vmem:[#allocation11] sm:$0xff]  ;;  %v242_v7 = vld [vmem:[#allocation11 + $0x8] sm:$0xff]  ;;  %v207_v17 = vld [vmem:[#allocation2 + $0x8] sm:$0xff]  ;;  %s306_s14 = sshll.u32 %s687_s30, 4  ;;  %s688_s27 = smov [#allocation16]   ;;  %s810_s14 = int_to_ptr.vmem [resolvable:$true] %s306_s14 }
  0x65   :  { %v243_v8 = vsub.f32 %v241_v6, %v208_v2  ;;  %v244_v9 = vsub.f32 %v242_v7, %v209_v5  ;;  %v211_v10 = vld [vmem:[#allocation8] sm:$0xff]  ;;  %v212_v11 = vld [vmem:[#allocation8 + $0x8] sm:$0xff]  ;;  %v225_v13 = vmul.f32 %v359_v3, %v359_v3  ;;  %v226_v14 = vmul.f32 %v360_v4, %v360_v4  ;;  %v231_v18 = vld [vmem:[#allocation10] sm:$0xff]  ;;  %s276_s28 = sshll.u32 %s688_s27, 4  ;;  %s689_s29 = smov [#allocation19]   ;;  %s812_s28 = int_to_ptr.vmem [resolvable:$true] %s276_s28 }
  0x66   :  { %v357_v15 = vadd.f32 -1.0, %v211_v10  ;;  %v358_v16 = vadd.f32 -1.0, %v212_v11  ;;  %v232_v19 = vld [vmem:[#allocation10 + $0x8] sm:$0xff]  ;;  %v233_v22 = vsub.f32 %v231_v18, %v206_v12  ;;  %v251_v24 = vld [vmem:[#allocation13] sm:$0xff]  ;;  %v261_v26 = vld [vmem:[#allocation14] sm:$0xff]  ;;  %s296_s15 = sshll.u32 %s689_s29, 4  ;;  %p543_p13 = scmp.lt.s32.totalorder %s287_s7, %s287_s7  ;;  %s814_s15 = int_to_ptr.vmem [resolvable:$true] %s296_s15 }
  0x67   :  { %v245_v20 = vmul.f32 %v243_v8, %v243_v8  ;;  %v246_v21 = vmul.f32 %v244_v9, %v244_v9  ;;  %v234_v23 = vsub.f32 %v232_v19, %v207_v17  ;;  %v252_v25 = vld [vmem:[#allocation13 + $0x8] sm:$0xff]  ;;  %v227_v27 = vadd.f32 %v226_v14, %v225_v13  ;;  %v262_v31 = vld [vmem:[#allocation14 + $0x8] sm:$0xff]  ;;  %s690_s16 = smov [#allocation22]   ;;  %s691_s17 = smov [#allocation23]  }
  0x68   :  { %v215_v28 = vmul.f32 %v357_v15, %v357_v15  ;;  %v216_v29 = vmul.f32 %v358_v16, %v358_v16  ;;  %v253_v30 = vsub.f32 %v251_v24, %v206_v12  ;;  %v235_v33 = vmul.f32 %v233_v22, %v233_v22  ;;  %s316_s5 = sshll.u32 %s690_s16, 4  ;;  %s818_s18 = sshll.u32 %s691_s17, 4  ;;  %s816_s5 = int_to_ptr.vmem [resolvable:$true] %s316_s5  ;;  %s327_s18 = int_to_ptr.vmem [resolvable:$true] %s818_s18 }
  0x69   :  { %v247_v32 = vadd.f32 %v246_v21, %v245_v20  ;;  %v236_v34 = vmul.f32 %v234_v23, %v234_v23  ;;  %v254_v35 = vsub.f32 %v252_v25, %v207_v17  ;;  %v263_v38 = vsub.f32 %v261_v26, %v208_v2  ;;  %229 = vst [vmem:[#allocation17] sm:$0xff] %v227_v27  ;;  %s538_s0 = scalar_lea.vmem %s287_s7, 128 }
  0x6a   :  { %v217_v36 = vadd.f32 %v216_v29, %v215_v28  ;;  %v255_v37 = vmul.f32 %v253_v30, %v253_v30  ;;  %v264_v41 = vsub.f32 %v262_v31, %v209_v5  ;;  %p539_p12 = scmp.ne.s32.totalorder %s287_s7, %s538_s0  ;;  %p544_p0 = scmp.lt.s32.totalorder %s538_s0, %s538_s0 }
  0x6b   :  { %v237_v39 = vadd.f32 %v236_v34, %v235_v33  ;;  %v256_v40 = vmul.f32 %v254_v35, %v254_v35  ;;  %v265_v42 = vmul.f32 %v263_v38, %v263_v38  ;;  %249 = vst [vmem:[#allocation20] sm:$0xff] %v247_v32 }
  0x6c   :  { %v266_v44 = vmul.f32 %v264_v41, %v264_v41  ;;  %p545_p1 = por %p544_p0, %p543_p13 }
  0x6d   :  { %v257_v43 = vadd.f32 %v256_v40, %v255_v37 }
  0x6e   :  { %p546_p2 = pnand %p545_p1, %p539_p12 }
  0x70   :  { %549 = shalt.err (!%p546_p2)
}
  0x71   :  { %289 = dma.vmem_to_hbm [thread:$0]  %s287_s7, 128, %s868_s9, [#allocation18]   ;;  %219 = vst [vmem:[#allocation16] sm:$0xff] %v217_v36 }
  0x72   :  { %s558_s21 = scalar_lea.vmem %s810_s14, 128  ;;  %p563_p4 = scmp.lt.s32.totalorder %s810_s14, %s810_s14 }
  0x73   :  { %p559_p3 = scmp.ne.s32.totalorder %s810_s14, %s558_s21  ;;  %p564_p5 = scmp.lt.s32.totalorder %s558_s21, %s558_s21 }
  0x75   :  { %p565_p6 = por %p564_p5, %p563_p4 }
  0x77   :  { %p566_p7 = pnand %p565_p6, %p559_p3 }
  0x79   :  { %569 = shalt.err (!%p566_p7)
}
  0x7a   :  { %309 = dma.vmem_to_hbm [thread:$0]  %s810_s14, 128, %s870_s11, [#allocation21]   ;;  %239 = vst [vmem:[#allocation19] sm:$0xff] %v237_v39  ;;  %v267_v45 = vadd.f32 %v266_v44, %v265_v42 }
  0x7b   :  { %s578_s9 = scalar_lea.vmem %s812_s28, 128  ;;  %p583_p9 = scmp.lt.s32.totalorder %s812_s28, %s812_s28 }
  0x7c   :  { %p579_p8 = scmp.ne.s32.totalorder %s812_s28, %s578_s9  ;;  %p584_p10 = scmp.lt.s32.totalorder %s578_s9, %s578_s9 }
  0x7e   :  { %p585_p11 = por %p584_p10, %p583_p9 }
  0x80   :  { %p586_p12 = pnand %p585_p11, %p579_p8 }
  0x82   :  { %589 = shalt.err (!%p586_p12)
}
  0x83   :  { %279 = dma.vmem_to_hbm [thread:$0]  %s812_s28, 128, %s867_s8, [#allocation4]  }
  0x84   :  { %s598_s24 = scalar_lea.vmem %s814_s15, 128  ;;  %p603_p0 = scmp.lt.s32.totalorder %s814_s15, %s814_s15 }
  0x85   :  { %p599_p13 = scmp.ne.s32.totalorder %s814_s15, %s598_s24  ;;  %p604_p1 = scmp.lt.s32.totalorder %s598_s24, %s598_s24 }
  0x87   :  { %p605_p2 = por %p604_p1, %p603_p0 }
  0x89   :  { %p606_p3 = pnand %p605_p2, %p599_p13 }
  0x8b   :  { %609 = shalt.err (!%p606_p3)
}
  0x8c   :  { %299 = dma.vmem_to_hbm [thread:$0]  %s814_s15, 128, %s869_s10, [#allocation18]   ;;  %259 = vst [vmem:[#allocation22] sm:$0xff] %v257_v43 }
  0x8d   :  { %s618_s8 = scalar_lea.vmem %s816_s5, 128  ;;  %p623_p5 = scmp.lt.s32.totalorder %s816_s5, %s816_s5 }
  0x8e   :  { %p619_p4 = scmp.ne.s32.totalorder %s816_s5, %s618_s8  ;;  %p624_p6 = scmp.lt.s32.totalorder %s618_s8, %s618_s8 }
  0x90   :  { %p625_p7 = por %p624_p6, %p623_p5 }
  0x92   :  { %p626_p8 = pnand %p625_p7, %p619_p4 }
  0x94   :  { %629 = shalt.err (!%p626_p8)
}
  0x95   :  { %319 = dma.vmem_to_hbm [thread:$0]  %s816_s5, 128, %s871_s12, [#allocation21]   ;;  %269 = vst [vmem:[#allocation23] sm:$0xff] %v267_v45 }
  0x96   :  { %s638_s26 = scalar_lea.vmem %s327_s18, 128  ;;  %p643_p10 = scmp.lt.s32.totalorder %s327_s18, %s327_s18 }
  0x97   :  { %p639_p9 = scmp.ne.s32.totalorder %s327_s18, %s638_s26  ;;  %p644_p11 = scmp.lt.s32.totalorder %s638_s26, %s638_s26 }
  0x99   :  { %p645_p12 = por %p644_p11, %p643_p10 }
  0x9b   :  { %p646_p13 = pnand %p645_p12, %p639_p9 }
  0x9d   :  { %649 = shalt.err (!%p646_p13)
}
  0x9e   :  { %329 = dma.vmem_to_hbm [thread:$0]  %s327_s18, 128, %s872_s13, [#allocation24]  }
  0x9f   :  { %668 = dma.done.wait [#allocation4], 128  }
  0xa0   :  { %669 = vsyncadd [#allocation4], 4294967168 }
  0xa1   :  { %670 = dma.done.wait [#allocation18], 256  }
  0xa2   :  { %671 = vsyncadd [#allocation18], 4294967040 }
  0xa3   :  { %672 = dma.done.wait [#allocation21], 256  }
  0xa4   :  { %673 = vsyncadd [#allocation21], 4294967040 }
  0xa5   :  { %674 = dma.done.wait [#allocation24], 128  }
  0xa6   :  { %675 = vsyncadd [#allocation24], 4294967168 }
  0xa7   :  { %348 = vsyncpa [#allocation3], 1 }
  0xa8   :  { %349 = vsyncpa [#allocation6], 1 }
  0xa9   :  { %350 = vsyncpa [#allocation9], 1 }
  0xaa   :  { %351 = vsyncpa [#allocation12], 1 }
  0xab   :  { %352 = vsyncpa [#allocation15], 1 }
  0xac   :  { %353 = vsyncpa [#allocation4], 1 }
  0xad   :  { %354 = vsyncpa [#allocation18], 1 }
  0xae   :  { %355 = vsyncpa [#allocation21], 1 }
  0xaf   :  { %356 = vsyncpa [#allocation24], 1 }

</bundles_post_ra>
